<compile_context>
chip_gen: v7x
topology: tpu7x:2x2x1
jax: 0.10.0
libtpu: 0.0.40
codegen_flags: <defaults>
</compile_context>

<pallas_src>
import math

import jax
import jax.numpy as jnp
from jax.experimental import pallas as pl
from jax.experimental.pallas import tpu as pltpu

LANES = 128
SUBLANES = 8
MIN_TILE = SUBLANES * LANES      # 1024 elements = one (8,128) f32 vreg
MAX_BLOCK_ROWS = 2048            # 2048x128 f32 = 1 MiB per input block
NUM_CORES = 2                    # leading 'parallel' axis (megacore on v7x)


# ----------------------------- Pallas kernel -------------------------------

def _make_reduce_kernel(op, n_inputs, block_rows, total_rows,
                        steps_per_core, needs_mask):
    """Tiled full-reduction kernel: sum(op(*inputs)) over the whole slab.

    Accumulates lane-wise partial sums into the resident (1, 8, 128) output
    block (pure vector adds under the memory-bound roofline).  The final
    cross-lane sum is done in JAX on 2x1024 floats.
    """

    def kernel(*refs):
        in_refs = refs[:n_inputs]
        o_ref = refs[n_inputs]
        i = pl.program_id(1)

        @pl.when(i == 0)
        def _():
            o_ref[...] = jnp.zeros_like(o_ref)

        contrib = op(*[r[...].astype(jnp.float32) for r in in_refs])

        if needs_mask:
            # Zero out (a) the ragged tail of the last in-bounds block and
            # (b) entire overshoot blocks (whose input index was clamped in
            # the index_map), using the *logical* global block index.
            g = pl.program_id(0) * steps_per_core + i
            row0 = g * block_rows
            ridx = jax.lax.broadcasted_iota(jnp.int32, (block_rows, LANES), 0)
            contrib = jnp.where(row0 + ridx < total_rows, contrib, 0.0)

        partial = contrib.reshape(-1, SUBLANES, LANES).sum(axis=0)   # (8,128)
        o_ref[...] += partial.reshape(1, SUBLANES, LANES)

    return kernel


def _tiled_reduce(op, flats, pad_value):
    """sum(op(*flats)) where flats are equally-sized flat (1-D) arrays."""
    n = flats[0].shape[0]
    n_pad = ((n + MIN_TILE - 1) // MIN_TILE) * MIN_TILE
    if n_pad != n:
        # TODO(synk): only taken when numel % 1024 != 0; costs one pad copy.
        flats = [jnp.pad(f, (0, n_pad - n), constant_values=pad_value)
                 for f in flats]
    slabs = [f.reshape(n_pad // LANES, LANES) for f in flats]

    rows = n_pad // LANES                          # multiple of 8
    block_rows = min(MAX_BLOCK_ROWS, rows)         # multiple of 8
    total_blocks = (rows + block_rows - 1) // block_rows
    num_cores = min(NUM_CORES, total_blocks)
    steps_per_core = (total_blocks + num_cores - 1) // num_cores
    needs_mask = (num_cores * steps_per_core * block_rows != rows)

    if num_cores * steps_per_core == total_blocks:
        def in_map(c, i):
            return (c * steps_per_core + i, 0)
    else:
        def in_map(c, i):
            # Clamp overshoot steps onto the last real block; the kernel's
            # mask (driven by the unclamped logical index) zeroes them out.
            return (jnp.minimum(c * steps_per_core + i, total_blocks - 1), 0)

    kernel = _make_reduce_kernel(op, len(slabs), block_rows, rows,
                                 steps_per_core, needs_mask)

    partials = pl.pallas_call(
        kernel,
        out_shape=jax.ShapeDtypeStruct((num_cores, SUBLANES, LANES),
                                       jnp.float32),
        grid=(num_cores, steps_per_core),
        in_specs=[pl.BlockSpec((block_rows, LANES), in_map) for _ in slabs],
        out_specs=pl.BlockSpec((1, SUBLANES, LANES), lambda c, i: (c, 0, 0)),
        compiler_params=pltpu.CompilerParams(
            dimension_semantics=("parallel", "arbitrary")),
    )(*slabs)
    # Final cross-core / cross-lane reduction: at most 2*1024 floats, in JAX.
    return jnp.sum(partials)


# --------------------------- loss "criterions" -----------------------------

class MSELoss:
    """Distortion term: mean squared error between x_hat and gt_image."""

    def __call__(self, model_output, gt_image):
        x_hat = model_output["x_hat"]
        sse = _tiled_reduce(
            lambda x, y: (x - y) * (x - y),
            [jnp.ravel(x_hat), jnp.ravel(gt_image)],
            pad_value=0.0,
        )
        mse = sse / jnp.float32(gt_image.size)
        return mse, {"mse_loss": mse}


class BppLoss:
    """Rate term: bits-per-pixel from the entropy-model likelihoods."""

    def __call__(self, model_output, gt_image):
        n, _, h, w = gt_image.shape
        num_pixels = n * h * w

        flats = []
        for name, p in sorted(model_output["likelihoods"].items()):
            if p.shape[0] != n:
                raise ValueError(
                    f"likelihood '{name}' batch {p.shape[0]} != image batch {n}")
            flats.append(jnp.ravel(p))
        flat = flats[0] if len(flats) == 1 else jnp.concatenate(flats)

        # Single fused pallas_call for all likelihood tensors.
        total_nll = _tiled_reduce(lambda p: -jnp.log(p), [flat], pad_value=1.0)
        bpp = total_nll / jnp.float32(math.log(2.0) * num_pixels)
        return bpp, {"bpp_loss": bpp}


class CompositeLoss:
    """Mirror of the PyTorch CompositeLoss.forward semantics."""

    def __init__(self, components):
        self._components = components

    def __call__(self, model_output, gt_image):
        loss_dict = {}
        total_loss = 0.0
        for criterion, weight in self._components:
            loss, local = criterion(model_output, gt_image)
            total_loss = total_loss + weight * loss
            loss_dict.update(local)
        loss_dict["loss"] = total_loss
        return loss_dict


# --------------------------------- main ------------------------------------

if __name__ == "__main__":
    key = jax.random.PRNGKey(0)
    k1, k2, k3 = jax.random.split(key, 3)

    # Small NCHW image + reconstruction and a latent-sized likelihood map.
    gt_image = jax.random.uniform(k1, (2, 4, 16, 16), dtype=jnp.float32)
    x_hat = gt_image + 0.05 * jax.random.normal(k2, (2, 4, 16, 16),
                                                dtype=jnp.float32)
    likelihoods_y = jax.random.uniform(k3, (2, 8, 4, 4), dtype=jnp.float32,
                                       minval=1e-3, maxval=1.0)

    model_output = {"x_hat": x_hat, "likelihoods": {"y": likelihoods_y}}

    composite = CompositeLoss([(MSELoss(), 255.0 ** 2 * 0.01),
                               (BppLoss(), 1.0)])

    loss_dict = composite(model_output, gt_image)
    jax.block_until_ready(loss_dict["loss"])

    # Pure-JAX reference check.
    ref_mse = jnp.mean((x_hat - gt_image) ** 2)
    ref_bpp = jnp.sum(-jnp.log(likelihoods_y)) / (math.log(2.0) * 2 * 16 * 16)
    ref_total = 255.0 ** 2 * 0.01 * ref_mse + ref_bpp
    assert jnp.allclose(loss_dict["mse_loss"], ref_mse, rtol=1e-5, atol=1e-6)
    assert jnp.allclose(loss_dict["bpp_loss"], ref_bpp, rtol=1e-5, atol=1e-6)
    assert jnp.allclose(loss_dict["loss"], ref_total, rtol=1e-5, atol=1e-5)

    print("KERNEL_OK")
</pallas_src>

<mosaic_0001>
module attributes {stable_mosaic.version = 11 : i64} {
  func.func @kernel(%arg0: i32, %arg1: i32, %arg2: memref<16x128xf32, #tpu.memory_space<vmem>>, %arg3: memref<16x128xf32, #tpu.memory_space<vmem>>, %arg4: memref<1x8x128xf32, #tpu.memory_space<vmem>>) attributes {dimension_semantics = [#tpu.dimension_semantics<parallel>, #tpu.dimension_semantics<arbitrary>], iteration_bounds = array<i64: 1, 1>, scalar_prefetch = 0 : i64, scratch_operands = 0 : i64, tpu.core_type = #tpu.core_type<tc>, window_params = [{transform_indices = @transform_0, window_bounds = array<i64: 16, 128>}, {transform_indices = @transform_1, window_bounds = array<i64: 16, 128>}, {transform_indices = @transform_2, window_bounds = array<i64: 1, 8, 128>}]} {
    %c0_i32 = arith.constant 0 : i32
    %0 = arith.cmpi eq, %arg1, %c0_i32 : i32
    %1 = arith.extui %0 : i1 to i32
    %c0_i32_0 = arith.constant 0 : i32
    %2 = arith.cmpi ne, %1, %c0_i32_0 : i32
    scf.if %2 {
      %cst_10 = arith.constant 0.000000e+00 : f32
      %14 = vector.broadcast %cst_10 : f32 to vector<1x8x128xf32>
      %c0_11 = arith.constant 0 : index
      %c0_12 = arith.constant 0 : index
      %c0_13 = arith.constant 0 : index
      %15 = vector.load %arg4[%c0_11, %c0_12, %c0_13] : memref<1x8x128xf32, #tpu.memory_space<vmem>>, vector<1x8x128xf32>
      tpu.vector_store %arg4[%c0_11, %c0_12, %c0_13], %14 {strides = array<i32>} : memref<1x8x128xf32, #tpu.memory_space<vmem>>, vector<1x8x128xf32>,
    } else {
    }
    %c0 = arith.constant 0 : index
    %c0_1 = arith.constant 0 : index
    %3 = vector.load %arg2[%c0, %c0_1] : memref<16x128xf32, #tpu.memory_space<vmem>>, vector<16x128xf32>
    %c0_2 = arith.constant 0 : index
    %c0_3 = arith.constant 0 : index
    %4 = vector.load %arg3[%c0_2, %c0_3] : memref<16x128xf32, #tpu.memory_space<vmem>>, vector<16x128xf32>
    %5 = arith.subf %3, %4 : vector<16x128xf32>
    %6 = arith.subf %3, %4 : vector<16x128xf32>
    %7 = arith.mulf %5, %6 : vector<16x128xf32>
    %8 = vector.shape_cast %7 : vector<16x128xf32> to vector<2x8x128xf32>
    %cst = arith.constant dense<0.000000e+00> : vector<8x128xf32>
    %9 = vector.multi_reduction <add>, %8, %cst [0] : vector<2x8x128xf32> to vector<8x128xf32>
    %c0_4 = arith.constant 0 : index
    %c0_5 = arith.constant 0 : index
    %c0_6 = arith.constant 0 : index
    %10 = vector.load %arg4[%c0_4, %c0_5, %c0_6] : memref<1x8x128xf32, #tpu.memory_space<vmem>>, vector<1x8x128xf32>
    %11 = vector.shape_cast %9 : vector<8x128xf32> to vector<1x8x128xf32>
    %12 = arith.addf %10, %11 : vector<1x8x128xf32>
    %c0_7 = arith.constant 0 : index
    %c0_8 = arith.constant 0 : index
    %c0_9 = arith.constant 0 : index
    %13 = vector.load %arg4[%c0_7, %c0_8, %c0_9] : memref<1x8x128xf32, #tpu.memory_space<vmem>>, vector<1x8x128xf32>
    tpu.vector_store %arg4[%c0_7, %c0_8, %c0_9], %12 {strides = array<i32>} : memref<1x8x128xf32, #tpu.memory_space<vmem>>, vector<1x8x128xf32>,
    return
  }
  func.func @transform_0(%arg0: i32, %arg1: i32) -> (i32, i32) {
    %c1_i32 = arith.constant 1 : i32
    %0 = arith.muli %arg0, %c1_i32 : i32
    %1 = arith.addi %0, %arg1 : i32
    %c0_i32 = arith.constant 0 : i32
    %c0_i32_0 = arith.constant 0 : i32
    return %1, %c0_i32 : i32, i32
  }
  func.func @transform_1(%arg0: i32, %arg1: i32) -> (i32, i32) {
    %c1_i32 = arith.constant 1 : i32
    %0 = arith.muli %arg0, %c1_i32 : i32
    %1 = arith.addi %0, %arg1 : i32
    %c0_i32 = arith.constant 0 : i32
    %c0_i32_0 = arith.constant 0 : i32
    return %1, %c0_i32 : i32, i32
  }
  func.func @transform_2(%arg0: i32, %arg1: i32) -> (i32, i32, i32) {
    %c0_i32 = arith.constant 0 : i32
    %c0_i32_0 = arith.constant 0 : i32
    %c0_i32_1 = arith.constant 0 : i32
    return %arg0, %c0_i32, %c0_i32_0 : i32, i32, i32
  }
}

</mosaic_0001>

<bundles_post_ra>
// kernel: tpu_custom_call.1
= control target key start
LH: loop header
LB: loop body
LE: loop exit
PB: predicated region body
PF: predicated region fallthrough
CT: control target
= control target key end

     0   :  { %7 = vsyncpa [#allocation3], 0  ;;  %s219_s0 = inlined_call_operand.hbm [shape: f32[16,128], index: 0, kind: input, shape index: {}]   ;;  %s220_s1 = inlined_call_operand.hbm [shape: f32[16,128], index: 1, kind: input, shape index: {}]   ;;  %s221_s2 = inlined_call_operand.hbm [shape: f32[1,8,128], index: 2, kind: output, shape index: {}]  }
   0x1   :  { %8 = vsyncpa [#allocation6], 0 }
   0x2   :  { %9 = vsyncpa [#allocation4], 0  ;;  %s163_s9 = smov [#allocation2]   ;;  %s91_s13 = scalar_lea.hbm %s219_s0, 256 }
   0x3   :  { %s19_s10 = sshll.u32 %s163_s9, 4  ;;  %p92_p0 = scmp.ne.s32.totalorder %s219_s0, %s91_s13  ;;  %s20_s10 = int_to_ptr.vmem [resolvable:$true] %s19_s10 }
   0x4   :  { %p95_p1 = scmp.lt.u32.totalorder %s91_s13, %s219_s0 }
   0x6   :  { %p97_p2 = pnand %p95_p1, %p92_p0 }
   0x8   :  { %100 = shalt.err (!%p97_p2)
}
   0x9   :  { %s101_s18 = scalar_lea.vmem %s20_s10, 256  ;;  %p106_p4 = scmp.lt.s32.totalorder %s20_s10, %s20_s10 }
   0xa   :  { %p102_p3 = scmp.ne.s32.totalorder %s20_s10, %s101_s18  ;;  %p107_p5 = scmp.lt.s32.totalorder %s101_s18, %s101_s18 }
   0xc   :  { %p108_p6 = por %p107_p5, %p106_p4 }
   0xe   :  { %p109_p7 = pnand %p108_p6, %p102_p3 }
  0x10   :  { %112 = shalt.err (!%p109_p7)
}
  0x11   :  { %s164_s19 = smov 128   ;;  %s165_s20 = smov 8  }
  0x12   :  { %25 = dma.hbm_to_vmem [thread:$0]  %s219_s0, 256, %s20_s10, [#allocation3], %s164_s19, %s164_s19, %s165_s20  }
  0x13   :  { %s166_s23 = smov [#allocation5]   ;;  %s113_s27 = scalar_lea.hbm %s220_s1, 256 }
  0x14   :  { %s35_s24 = sshll.u32 %s166_s23, 4  ;;  %p114_p8 = scmp.ne.s32.totalorder %s220_s1, %s113_s27  ;;  %s36_s24 = int_to_ptr.vmem [resolvable:$true] %s35_s24 }
  0x15   :  { %p117_p9 = scmp.lt.u32.totalorder %s113_s27, %s220_s1 }
  0x17   :  { %p119_p10 = pnand %p117_p9, %p114_p8 }
  0x19   :  { %122 = shalt.err (!%p119_p10)
}
  0x1a   :  { %s123_s4 = scalar_lea.vmem %s36_s24, 256  ;;  %p128_p12 = scmp.lt.s32.totalorder %s36_s24, %s36_s24 }
  0x1b   :  { %p124_p11 = scmp.ne.s32.totalorder %s36_s24, %s123_s4  ;;  %p129_p13 = scmp.lt.s32.totalorder %s123_s4, %s123_s4 }
  0x1d   :  { %p130_p0 = por %p129_p13, %p128_p12 }
  0x1f   :  { %p131_p1 = pnand %p130_p0, %p124_p11 }
  0x21   :  { %134 = shalt.err (!%p131_p1)
}
  0x22   :  { %41 = dma.hbm_to_vmem [thread:$0]  %s220_s1, 256, %s36_s24, [#allocation6], %s164_s19, %s164_s19, %s165_s20  }
  0x23   :  { %157 = dma.done.wait [#allocation3], 256  }
  0x24   :  { %158 = vsyncadd [#allocation3], 4294967040 }
  0x25   :  { %159 = dma.done.wait [#allocation6], 256  }
  0x26   :  { %160 = vsyncadd [#allocation6], 4294967040  ;;  %v57_v0 = vld [vmem:[#allocation2] sm:$0xff]  ;;  %v58_v1 = vld [vmem:[#allocation2 + $0x8] sm:$0xff]  ;;  %s167_s6 = smov [#allocation7]  }
  0x27   :  { %v59_v2 = vld [vmem:[#allocation5] sm:$0xff]  ;;  %v60_v3 = vld [vmem:[#allocation5 + $0x8] sm:$0xff]  ;;  %s75_s7 = sshll.u32 %s167_s6, 4  ;;  %s76_s7 = int_to_ptr.vmem [resolvable:$true] %s75_s7 }
  0x28   :  { %v61_v4 = vsub.f32 %v57_v0, %v59_v2  ;;  %v62_v5 = vsub.f32 %v58_v1, %v60_v3  ;;  %s135_s8 = scalar_lea.vmem %s76_s7, 128  ;;  %p140_p3 = scmp.lt.s32.totalorder %s76_s7, %s76_s7 }
  0x29   :  { %p136_p2 = scmp.ne.s32.totalorder %s76_s7, %s135_s8  ;;  %p141_p4 = scmp.lt.s32.totalorder %s135_s8, %s135_s8 }
  0x2a   :  { %v63_v6 = vmul.f32 %v61_v4, %v61_v4  ;;  %v64_v7 = vmul.f32 %v62_v5, %v62_v5 }
  0x2b   :  { %p142_p5 = por %p141_p4, %p140_p3 }
  0x2c   :  { %v65_v8 = vadd.f32 %v64_v7, %v63_v6 }
  0x2d   :  { %p143_p6 = pnand %p142_p5, %p136_p2 }
  0x2e   :  { %68 = vst [vmem:[#allocation7] sm:$0xff] %v65_v8 }
  0x2f   :  { %146 = shalt.err (!%p143_p6)
}
  0x30   :  { %s147_s10 = scalar_lea.hbm %s221_s2, 128 }
  0x31   :  { %p148_p7 = scmp.ne.s32.totalorder %s221_s2, %s147_s10  ;;  %p151_p8 = scmp.lt.u32.totalorder %s147_s10, %s221_s2 }
  0x33   :  { %p153_p9 = pnand %p151_p8, %p148_p7 }
  0x35   :  { %156 = shalt.err (!%p153_p9)
}
  0x36   :  { %78 = dma.vmem_to_hbm [thread:$0]  %s76_s7, 128, %s221_s2, [#allocation4]  }
  0x37   :  { %161 = dma.done.wait [#allocation4], 128  }
  0x38   :  { %162 = vsyncadd [#allocation4], 4294967168 }
  0x39   :  { %82 = vsyncpa [#allocation3], 1 }
  0x3a   :  { %83 = vsyncpa [#allocation6], 1 }
  0x3b   :  { %84 = vsyncpa [#allocation4], 1 }

</bundles_post_ra>
